<compile_context>
chip_gen: v7x
topology: tpu7x:2x2x1
jax: 0.10.0
libtpu: 0.0.40
codegen_flags: <defaults>
</compile_context>

<pallas_src>
import functools

import jax
import jax.numpy as jnp
from jax.experimental import pallas as pl
from jax.experimental.pallas import tpu as pltpu


def _dwconv_kernel(x_ref, halo_ref, wt_ref, bias_ref, o_ref, xs_ref, *,
                   tile_h, width, main_off):
    """One (batch, H-strip) step of fused depthwise-3x3 + pointwise-1x1.

    x_ref:    (1, Cin, TH*W)     main strip, rows flattened onto the lane axis
    halo_ref: (1, 1, Cin, 2*W)   [top halo row | bottom halo row] for this strip
    wt_ref:   (9, Cout, Cin)     fused per-tap weights  dw[dy,dx,c] * pw[o,c]
    bias_ref: (Cout, 1)          fused bias  pw @ dw_b + pw_b   (f32)
    o_ref:    (1, Cout, TH*W)
    xs_ref:   (Cin, main_off + TH*W + W + 1)  stitched padded strip (scratch)
    """
    th, w = tile_h, width
    thw = th * w
    cout = o_ref.shape[1]
    a = main_off  # lane offset of the main strip inside xs (multiple of 128)

    # Stitch [ ...dead... | top halo | main strip | bottom halo | guard ] in VMEM.
    # Dead/guard lanes are only ever read at positions that get masked below,
    # so they never need to be initialized.
    halo = halo_ref[0, 0]                              # (Cin, 2*W)
    xs_ref[:, a - w:a] = halo[:, :w]                   # padded row 0
    xs_ref[:, a:a + thw] = x_ref[0]                    # padded rows 1..TH (aligned)
    xs_ref[:, a + thw:a + thw + w] = halo[:, w:]       # padded row TH+1

    # Column-validity masks implementing the zero padding along W.
    col = jax.lax.broadcasted_iota(jnp.int32, (1, thw), 1) % w
    not_first_col = col > 0          # needed for dx == 0 (left tap)
    not_last_col = col < (w - 1)     # needed for dx == 2 (right tap)

    acc = jnp.zeros((cout, thw), jnp.float32)
    for dy in range(3):
        for dx in range(3):
            # output pixel p needs padded pixel p + (dy-1)*W + (dx-1)
            start = a + (dy - 1) * w + (dx - 1)
            xt = xs_ref[:, start:start + thw]          # (Cin, TH*W), input dtype
            if dx == 0:
                xt = jnp.where(not_first_col, xt, 0.0)
            elif dx == 2:
                xt = jnp.where(not_last_col, xt, 0.0)
            acc = acc + jnp.dot(wt_ref[3 * dy + dx], xt,
                                preferred_element_type=jnp.float32)

    acc = acc + bias_ref[...]                          # (Cout, 1) broadcasts over lanes
    o_ref[0] = acc.astype(o_ref.dtype)


def _choose_tile_h(h, w, in_plane, out_plane, itemsize, budget_bytes=4 << 20):
    """Largest divisor of H whose strip fits the VMEM budget, with TH*W a multiple
    of 128 lanes (or the full image as a fallback). Prefers >=2 strips so megacore
    gets parallel blocks and the pipeline has some depth."""
    cands = [th for th in range(1, h + 1)
             if h % th == 0 and ((th * w) % 128 == 0 or th == h)]

    def bytes_per_step(th):
        # double-buffered input + output strips (the dominant VMEM users)
        return 2 * th * w * (in_plane + out_plane) * itemsize

    fitting = sorted(th for th in cands if bytes_per_step(th) <= budget_bytes)
    if not fitting:
        return min(cands)
    th = fitting[-1]
    if th == h and len(fitting) > 1:
        th = fitting[-2]
    return th


def dwconv_pallas(x_nchw, depth_w, depth_b, point_w, point_b):
    """x_nchw: (N, Cin, H, W). PyTorch parameter layouts:
       depth_w (Cin,1,3,3), depth_b (Cin,), point_w (Cout,Cin,1,1), point_b (Cout,)."""
    n, cin, h, w = x_nchw.shape
    cout = point_w.shape[0]
    dtype = x_nchw.dtype

    # ---- fold depthwise into pointwise (tiny one-time work on the parameters) ----
    pw = point_w[:, :, 0, 0].astype(jnp.float32)                       # (Cout, Cin)
    dw = jnp.transpose(depth_w[:, 0, :, :], (1, 2, 0)).reshape(9, cin).astype(jnp.float32)
    wt = (dw[:, None, :] * pw[None, :, :]).astype(dtype)               # (9, Cout, Cin)
    bias = (pw @ depth_b.astype(jnp.float32)
            + point_b.astype(jnp.float32)).reshape(cout, 1)            # (Cout, 1) f32

    # ---- spatial tiling over H ----
    th = _choose_tile_h(h, w, cin, cout, jnp.dtype(dtype).itemsize)
    nh = h // th

    # ---- lane-dense flat view of the activations (free reshape, no transpose/pad) ----
    x_flat = x_nchw.reshape(n, cin, h * w)

    # ---- tiny per-strip halo rows: 2 rows per strip, zeros at the image border ----
    if nh > 1:
        top = x_nchw[:, :, th - 1::th, :][:, :, :nh - 1, :]            # row i*TH-1
        top = jnp.pad(top, ((0, 0), (0, 0), (1, 0), (0, 0)))
        bot = jnp.pad(x_nchw[:, :, th::th, :],                         # row (i+1)*TH
                      ((0, 0), (0, 0), (0, 1), (0, 0)))
    else:
        top = jnp.zeros((n, cin, 1, w), dtype)
        bot = jnp.zeros((n, cin, 1, w), dtype)
    halo = jnp.stack([top, bot], axis=3)                               # (N, Cin, nH, 2, W)
    halo = jnp.transpose(halo, (0, 2, 1, 3, 4)).reshape(n, nh, cin, 2 * w)

    main_off = max(128, -(-(w + 1) // 128) * 128)                      # 128-aligned
    scratch_len = main_off + th * w + w + 1

    out_flat = pl.pallas_call(
        functools.partial(_dwconv_kernel, tile_h=th, width=w, main_off=main_off),
        out_shape=jax.ShapeDtypeStruct((n, cout, h * w), dtype),
        grid_spec=pltpu.PrefetchScalarGridSpec(
            num_scalar_prefetch=0,
            grid=(n, nh),
            in_specs=[
                pl.BlockSpec((1, cin, th * w), lambda b, i: (b, 0, i)),      # main strip
                pl.BlockSpec((1, 1, cin, 2 * w), lambda b, i: (b, i, 0, 0)),  # halo rows
                pl.BlockSpec((9, cout, cin), lambda b, i: (0, 0, 0)),         # fused taps
                pl.BlockSpec((cout, 1), lambda b, i: (0, 0)),                 # fused bias
            ],
            out_specs=pl.BlockSpec((1, cout, th * w), lambda b, i: (b, 0, i)),
            scratch_shapes=[pltpu.VMEM((cin, scratch_len), dtype)],
        ),
        compiler_params=pltpu.CompilerParams(
            dimension_semantics=("parallel", "parallel"),
            vmem_limit_bytes=32 * 1024 * 1024,
        ),
    )(x_flat, halo, wt, bias)

    return out_flat.reshape(n, cout, h, w)   # free reshape back to NCHW


def _reference_dwconv(x, depth_w, depth_b, point_w, point_b):
    # Pure-JAX NCHW reference (mirrors nn.Conv2d semantics).
    cin = x.shape[1]
    y = jax.lax.conv_general_dilated(
        x, depth_w, window_strides=(1, 1), padding=((1, 1), (1, 1)),
        dimension_numbers=("NCHW", "OIHW", "NCHW"), feature_group_count=cin)
    y = y + depth_b[None, :, None, None]
    z = jax.lax.conv_general_dilated(
        y, point_w, window_strides=(1, 1), padding=((0, 0), (0, 0)),
        dimension_numbers=("NCHW", "OIHW", "NCHW"))
    z = z + point_b[None, :, None, None]
    return z


if __name__ == "__main__":
    N, Cin, Cout, H, W = 2, 4, 8, 16, 16
    key = jax.random.PRNGKey(0)
    kx, k1, k2, k3, k4 = jax.random.split(key, 5)

    x = jax.random.normal(kx, (N, Cin, H, W), dtype=jnp.float32)
    depth_w = jax.random.normal(k1, (Cin, 1, 3, 3), dtype=jnp.float32) * 0.1
    depth_b = jax.random.normal(k2, (Cin,), dtype=jnp.float32) * 0.1
    point_w = jax.random.normal(k3, (Cout, Cin, 1, 1), dtype=jnp.float32) * 0.1
    point_b = jax.random.normal(k4, (Cout,), dtype=jnp.float32) * 0.1

    dwconv = jax.jit(dwconv_pallas)
    out = dwconv(x, depth_w, depth_b, point_w, point_b)
    out = jax.block_until_ready(out)

    ref = _reference_dwconv(x, depth_w, depth_b, point_w, point_b)
    assert out.shape == (N, Cout, H, W)
    assert jnp.allclose(out, ref, atol=1e-4, rtol=1e-4)

    print("KERNEL_OK")
</pallas_src>

<mosaic_0001>
module attributes {stable_mosaic.version = 11 : i64} {
  func.func @_dwconv_kernel(%arg0: i32, %arg1: i32, %arg2: memref<1x4x128xf32, #tpu.memory_space<vmem>>, %arg3: memref<1x1x4x32xf32, #tpu.memory_space<vmem>>, %arg4: memref<9x8x4xf32, #tpu.memory_space<vmem>>, %arg5: memref<8x1xf32, #tpu.memory_space<vmem>>, %arg6: memref<1x8x128xf32, #tpu.memory_space<vmem>>, %arg7: memref<4x273xf32, #tpu.memory_space<vmem>>) attributes {dimension_semantics = [#tpu.dimension_semantics<parallel>, #tpu.dimension_semantics<parallel>], iteration_bounds = array<i64: 2, 2>, scalar_prefetch = 0 : i64, scratch_operands = 1 : i64, tpu.core_type = #tpu.core_type<tc>, window_params = [{transform_indices = @transform_0, window_bounds = array<i64: 1, 4, 128>}, {transform_indices = @transform_1, window_bounds = array<i64: 1, 1, 4, 32>}, {pipeline_mode = #tpu.pipeline_mode<synchronous>, transform_indices = @transform_2, window_bounds = array<i64: 9, 8, 4>}, {pipeline_mode = #tpu.pipeline_mode<synchronous>, transform_indices = @transform_3, window_bounds = array<i64: 8, 1>}, {transform_indices = @transform_4, window_bounds = array<i64: 1, 8, 128>}]} {
    %c0 = arith.constant 0 : index
    %c0_0 = arith.constant 0 : index
    %c0_1 = arith.constant 0 : index
    %c0_2 = arith.constant 0 : index
    %0 = vector.load %arg3[%c0, %c0_0, %c0_1, %c0_2] : memref<1x1x4x32xf32, #tpu.memory_space<vmem>>, vector<1x1x4x32xf32>
    %1 = vector.shape_cast %0 : vector<1x1x4x32xf32> to vector<4x32xf32>
    %2 = vector.extract_strided_slice %1 {offsets = [0, 0], sizes = [4, 16], strides = [1, 1]} : vector<4x32xf32> to vector<4x16xf32>
    %c0_3 = arith.constant 0 : index
    %c112 = arith.constant 112 : index
    %3 = vector.load %arg7[%c0_3, %c112] : memref<4x273xf32, #tpu.memory_space<vmem>>, vector<4x16xf32>
    tpu.vector_store %arg7[%c0_3, %c112], %2 {strides = array<i32>} : memref<4x273xf32, #tpu.memory_space<vmem>>, vector<4x16xf32>,
    %c0_4 = arith.constant 0 : index
    %c0_5 = arith.constant 0 : index
    %c0_6 = arith.constant 0 : index
    %4 = vector.load %arg2[%c0_4, %c0_5, %c0_6] : memref<1x4x128xf32, #tpu.memory_space<vmem>>, vector<1x4x128xf32>
    %5 = vector.shape_cast %4 : vector<1x4x128xf32> to vector<4x128xf32>
    %c0_7 = arith.constant 0 : index
    %c128 = arith.constant 128 : index
    %6 = vector.load %arg7[%c0_7, %c128] : memref<4x273xf32, #tpu.memory_space<vmem>>, vector<4x128xf32>
    tpu.vector_store %arg7[%c0_7, %c128], %5 {strides = array<i32>} : memref<4x273xf32, #tpu.memory_space<vmem>>, vector<4x128xf32>,
    %7 = vector.extract_strided_slice %1 {offsets = [0, 16], sizes = [4, 16], strides = [1, 1]} : vector<4x32xf32> to vector<4x16xf32>
    %c0_8 = arith.constant 0 : index
    %c256 = arith.constant 256 : index
    %8 = vector.load %arg7[%c0_8, %c256] : memref<4x273xf32, #tpu.memory_space<vmem>>, vector<4x16xf32>
    tpu.vector_store %arg7[%c0_8, %c256], %7 {strides = array<i32>} : memref<4x273xf32, #tpu.memory_space<vmem>>, vector<4x16xf32>,
    %9 = tpu.iota {dimensions = array<i32: 1>} : vector<1x128xi32>
    %c16_i32 = arith.constant 16 : i32
    %c0_i32 = arith.constant 0 : i32
    %10 = arith.cmpi eq, %c16_i32, %c0_i32 : i32
    %c1_i32 = arith.constant 1 : i32
    %11 = arith.select %10, %c1_i32, %c16_i32 : i32
    %12 = vector.broadcast %11 : i32 to vector<1x128xi32>
    %13 = arith.remsi %9, %12 : vector<1x128xi32>
    %c0_i32_9 = arith.constant 0 : i32
    %14 = vector.broadcast %c0_i32_9 : i32 to vector<1x128xi32>
    %15 = arith.cmpi ne, %13, %14 : vector<1x128xi32>
    %c0_i32_10 = arith.constant 0 : i32
    %16 = vector.broadcast %c0_i32_10 : i32 to vector<1x128xi32>
    %17 = arith.cmpi slt, %13, %16 : vector<1x128xi32>
    %c0_i32_11 = arith.constant 0 : i32
    %18 = arith.cmpi slt, %11, %c0_i32_11 : i32
    %19 = vector.broadcast %18 : i1 to vector<1x128xi1>
    %20 = vector.broadcast %19 : vector<1x128xi1> to vector<1x128xi1>
    %21 = arith.xori %17, %20 : vector<1x128xi1>
    %22 = arith.andi %21, %15 : vector<1x128xi1>
    %23 = vector.broadcast %11 : i32 to vector<1x128xi32>
    %24 = arith.addi %13, %23 : vector<1x128xi32>
    %25 = arith.select %22, %24, %13 : vector<1x128xi1>, vector<1x128xi32>
    %c0_i32_12 = arith.constant 0 : i32
    %26 = vector.broadcast %c0_i32_12 : i32 to vector<1x128xi32>
    %27 = arith.cmpi sgt, %25, %26 : vector<1x128xi32>
    %c15_i32 = arith.constant 15 : i32
    %28 = vector.broadcast %c15_i32 : i32 to vector<1x128xi32>
    %29 = arith.cmpi slt, %25, %28 : vector<1x128xi32>
    %cst = arith.constant 0.000000e+00 : f32
    %30 = vector.broadcast %cst : f32 to vector<8x128xf32>
    %c0_13 = arith.constant 0 : index
    %c111 = arith.constant 111 : index
    %31 = vector.load %arg7[%c0_13, %c111] : memref<4x273xf32, #tpu.memory_space<vmem>>, vector<4x128xf32>
    %cst_14 = arith.constant 0.000000e+00 : f32
    %32 = vector.shape_cast %27 : vector<1x128xi1> to vector<1x128xi1>
    %33 = vector.broadcast %32 : vector<1x128xi1> to vector<4x128xi1>
    %34 = vector.broadcast %cst_14 : f32 to vector<4x128xf32>
    %35 = arith.select %33, %31, %34 : vector<4x128xi1>, vector<4x128xf32>
    %c0_15 = arith.constant 0 : index
    %c0_16 = arith.constant 0 : index
    %c0_17 = arith.constant 0 : index
    %36 = vector.load %arg4[%c0_15, %c0_16, %c0_17] : memref<9x8x4xf32, #tpu.memory_space<vmem>>, vector<1x8x4xf32>
    %37 = vector.shape_cast %36 : vector<1x8x4xf32> to vector<8x4xf32>
    %cst_18 = arith.constant dense<0.000000e+00> : vector<8x128xf32>
    %38 = tpu.matmul %37, %35, %cst_18 {dimension_numbers = #tpu.dot_dimension_numbers<[1], [0], [0], [1], [0, 0, 1, 1], [], []>} : vector<8x4xf32>, vector<4x128xf32>, vector<8x128xf32> -> vector<8x128xf32>
    %39 = arith.addf %30, %38 : vector<8x128xf32>
    %c0_19 = arith.constant 0 : index
    %c112_20 = arith.constant 112 : index
    %40 = vector.load %arg7[%c0_19, %c112_20] : memref<4x273xf32, #tpu.memory_space<vmem>>, vector<4x128xf32>
    %c1 = arith.constant 1 : index
    %c0_21 = arith.constant 0 : index
    %c0_22 = arith.constant 0 : index
    %41 = vector.load %arg4[%c1, %c0_21, %c0_22] : memref<9x8x4xf32, #tpu.memory_space<vmem>>, vector<1x8x4xf32>
    %42 = vector.shape_cast %41 : vector<1x8x4xf32> to vector<8x4xf32>
    %cst_23 = arith.constant dense<0.000000e+00> : vector<8x128xf32>
    %43 = tpu.matmul %42, %40, %cst_23 {dimension_numbers = #tpu.dot_dimension_numbers<[1], [0], [0], [1], [0, 0, 1, 1], [], []>} : vector<8x4xf32>, vector<4x128xf32>, vector<8x128xf32> -> vector<8x128xf32>
    %44 = arith.addf %39, %43 : vector<8x128xf32>
    %c0_24 = arith.constant 0 : index
    %c113 = arith.constant 113 : index
    %45 = vector.load %arg7[%c0_24, %c113] : memref<4x273xf32, #tpu.memory_space<vmem>>, vector<4x128xf32>
    %cst_25 = arith.constant 0.000000e+00 : f32
    %46 = vector.shape_cast %29 : vector<1x128xi1> to vector<1x128xi1>
    %47 = vector.broadcast %46 : vector<1x128xi1> to vector<4x128xi1>
    %48 = vector.broadcast %cst_25 : f32 to vector<4x128xf32>
    %49 = arith.select %47, %45, %48 : vector<4x128xi1>, vector<4x128xf32>
    %c2 = arith.constant 2 : index
    %c0_26 = arith.constant 0 : index
    %c0_27 = arith.constant 0 : index
    %50 = vector.load %arg4[%c2, %c0_26, %c0_27] : memref<9x8x4xf32, #tpu.memory_space<vmem>>, vector<1x8x4xf32>
    %51 = vector.shape_cast %50 : vector<1x8x4xf32> to vector<8x4xf32>
    %cst_28 = arith.constant dense<0.000000e+00> : vector<8x128xf32>
    %52 = tpu.matmul %51, %49, %cst_28 {dimension_numbers = #tpu.dot_dimension_numbers<[1], [0], [0], [1], [0, 0, 1, 1], [], []>} : vector<8x4xf32>, vector<4x128xf32>, vector<8x128xf32> -> vector<8x128xf32>
    %53 = arith.addf %44, %52 : vector<8x128xf32>
    %c0_29 = arith.constant 0 : index
    %c127 = arith.constant 127 : index
    %54 = vector.load %arg7[%c0_29, %c127] : memref<4x273xf32, #tpu.memory_space<vmem>>, vector<4x128xf32>
    %cst_30 = arith.constant 0.000000e+00 : f32
    %55 = vector.shape_cast %27 : vector<1x128xi1> to vector<1x128xi1>
    %56 = vector.broadcast %55 : vector<1x128xi1> to vector<4x128xi1>
    %57 = vector.broadcast %cst_30 : f32 to vector<4x128xf32>
    %58 = arith.select %56, %54, %57 : vector<4x128xi1>, vector<4x128xf32>
    %c3 = arith.constant 3 : index
    %c0_31 = arith.constant 0 : index
    %c0_32 = arith.constant 0 : index
    %59 = vector.load %arg4[%c3, %c0_31, %c0_32] : memref<9x8x4xf32, #tpu.memory_space<vmem>>, vector<1x8x4xf32>
    %60 = vector.shape_cast %59 : vector<1x8x4xf32> to vector<8x4xf32>
    %cst_33 = arith.constant dense<0.000000e+00> : vector<8x128xf32>
    %61 = tpu.matmul %60, %58, %cst_33 {dimension_numbers = #tpu.dot_dimension_numbers<[1], [0], [0], [1], [0, 0, 1, 1], [], []>} : vector<8x4xf32>, vector<4x128xf32>, vector<8x128xf32> -> vector<8x128xf32>
    %62 = arith.addf %53, %61 : vector<8x128xf32>
    %c0_34 = arith.constant 0 : index
    %c128_35 = arith.constant 128 : index
    %63 = vector.load %arg7[%c0_34, %c128_35] : memref<4x273xf32, #tpu.memory_space<vmem>>, vector<4x128xf32>
    %c4 = arith.constant 4 : index
    %c0_36 = arith.constant 0 : index
    %c0_37 = arith.constant 0 : index
    %64 = vector.load %arg4[%c4, %c0_36, %c0_37] : memref<9x8x4xf32, #tpu.memory_space<vmem>>, vector<1x8x4xf32>
    %65 = vector.shape_cast %64 : vector<1x8x4xf32> to vector<8x4xf32>
    %cst_38 = arith.constant dense<0.000000e+00> : vector<8x128xf32>
    %66 = tpu.matmul %65, %63, %cst_38 {dimension_numbers = #tpu.dot_dimension_numbers<[1], [0], [0], [1], [0, 0, 1, 1], [], []>} : vector<8x4xf32>, vector<4x128xf32>, vector<8x128xf32> -> vector<8x128xf32>
    %67 = arith.addf %62, %66 : vector<8x128xf32>
    %c0_39 = arith.constant 0 : index
    %c129 = arith.constant 129 : index
    %68 = vector.load %arg7[%c0_39, %c129] : memref<4x273xf32, #tpu.memory_space<vmem>>, vector<4x128xf32>
    %cst_40 = arith.constant 0.000000e+00 : f32
    %69 = vector.shape_cast %29 : vector<1x128xi1> to vector<1x128xi1>
    %70 = vector.broadcast %69 : vector<1x128xi1> to vector<4x128xi1>
    %71 = vector.broadcast %cst_40 : f32 to vector<4x128xf32>
    %72 = arith.select %70, %68, %71 : vector<4x128xi1>, vector<4x128xf32>
    %c5 = arith.constant 5 : index
    %c0_41 = arith.constant 0 : index
    %c0_42 = arith.constant 0 : index
    %73 = vector.load %arg4[%c5, %c0_41, %c0_42] : memref<9x8x4xf32, #tpu.memory_space<vmem>>, vector<1x8x4xf32>
    %74 = vector.shape_cast %73 : vector<1x8x4xf32> to vector<8x4xf32>
    %cst_43 = arith.constant dense<0.000000e+00> : vector<8x128xf32>
    %75 = tpu.matmul %74, %72, %cst_43 {dimension_numbers = #tpu.dot_dimension_numbers<[1], [0], [0], [1], [0, 0, 1, 1], [], []>} : vector<8x4xf32>, vector<4x128xf32>, vector<8x128xf32> -> vector<8x128xf32>
    %76 = arith.addf %67, %75 : vector<8x128xf32>
    %c0_44 = arith.constant 0 : index
    %c143 = arith.constant 143 : index
    %77 = vector.load %arg7[%c0_44, %c143] : memref<4x273xf32, #tpu.memory_space<vmem>>, vector<4x128xf32>
    %cst_45 = arith.constant 0.000000e+00 : f32
    %78 = vector.shape_cast %27 : vector<1x128xi1> to vector<1x128xi1>
    %79 = vector.broadcast %78 : vector<1x128xi1> to vector<4x128xi1>
    %80 = vector.broadcast %cst_45 : f32 to vector<4x128xf32>
    %81 = arith.select %79, %77, %80 : vector<4x128xi1>, vector<4x128xf32>
    %c6 = arith.constant 6 : index
    %c0_46 = arith.constant 0 : index
    %c0_47 = arith.constant 0 : index
    %82 = vector.load %arg4[%c6, %c0_46, %c0_47] : memref<9x8x4xf32, #tpu.memory_space<vmem>>, vector<1x8x4xf32>
    %83 = vector.shape_cast %82 : vector<1x8x4xf32> to vector<8x4xf32>
    %cst_48 = arith.constant dense<0.000000e+00> : vector<8x128xf32>
    %84 = tpu.matmul %83, %81, %cst_48 {dimension_numbers = #tpu.dot_dimension_numbers<[1], [0], [0], [1], [0, 0, 1, 1], [], []>} : vector<8x4xf32>, vector<4x128xf32>, vector<8x128xf32> -> vector<8x128xf32>
    %85 = arith.addf %76, %84 : vector<8x128xf32>
    %c0_49 = arith.constant 0 : index
    %c144 = arith.constant 144 : index
    %86 = vector.load %arg7[%c0_49, %c144] : memref<4x273xf32, #tpu.memory_space<vmem>>, vector<4x128xf32>
    %c7 = arith.constant 7 : index
    %c0_50 = arith.constant 0 : index
    %c0_51 = arith.constant 0 : index
    %87 = vector.load %arg4[%c7, %c0_50, %c0_51] : memref<9x8x4xf32, #tpu.memory_space<vmem>>, vector<1x8x4xf32>
    %88 = vector.shape_cast %87 : vector<1x8x4xf32> to vector<8x4xf32>
    %cst_52 = arith.constant dense<0.000000e+00> : vector<8x128xf32>
    %89 = tpu.matmul %88, %86, %cst_52 {dimension_numbers = #tpu.dot_dimension_numbers<[1], [0], [0], [1], [0, 0, 1, 1], [], []>} : vector<8x4xf32>, vector<4x128xf32>, vector<8x128xf32> -> vector<8x128xf32>
    %90 = arith.addf %85, %89 : vector<8x128xf32>
    %c0_53 = arith.constant 0 : index
    %c145 = arith.constant 145 : index
    %91 = vector.load %arg7[%c0_53, %c145] : memref<4x273xf32, #tpu.memory_space<vmem>>, vector<4x128xf32>
    %cst_54 = arith.constant 0.000000e+00 : f32
    %92 = vector.shape_cast %29 : vector<1x128xi1> to vector<1x128xi1>
    %93 = vector.broadcast %92 : vector<1x128xi1> to vector<4x128xi1>
    %94 = vector.broadcast %cst_54 : f32 to vector<4x128xf32>
    %95 = arith.select %93, %91, %94 : vector<4x128xi1>, vector<4x128xf32>
    %c8 = arith.constant 8 : index
    %c0_55 = arith.constant 0 : index
    %c0_56 = arith.constant 0 : index
    %96 = vector.load %arg4[%c8, %c0_55, %c0_56] : memref<9x8x4xf32, #tpu.memory_space<vmem>>, vector<1x8x4xf32>
    %97 = vector.shape_cast %96 : vector<1x8x4xf32> to vector<8x4xf32>
    %cst_57 = arith.constant dense<0.000000e+00> : vector<8x128xf32>
    %98 = tpu.matmul %97, %95, %cst_57 {dimension_numbers = #tpu.dot_dimension_numbers<[1], [0], [0], [1], [0, 0, 1, 1], [], []>} : vector<8x4xf32>, vector<4x128xf32>, vector<8x128xf32> -> vector<8x128xf32>
    %99 = arith.addf %90, %98 : vector<8x128xf32>
    %c0_58 = arith.constant 0 : index
    %c0_59 = arith.constant 0 : index
    %100 = vector.load %arg5[%c0_58, %c0_59] : memref<8x1xf32, #tpu.memory_space<vmem>>, vector<8x1xf32>
    %101 = vector.broadcast %100 : vector<8x1xf32> to vector<8x128xf32>
    %102 = arith.addf %99, %101 : vector<8x128xf32>
    %c0_60 = arith.constant 0 : index
    %c0_61 = arith.constant 0 : index
    %c0_62 = arith.constant 0 : index
    %103 = vector.load %arg6[%c0_60, %c0_61, %c0_62] : memref<1x8x128xf32, #tpu.memory_space<vmem>>, vector<1x8x128xf32>
    %104 = vector.shape_cast %103 : vector<1x8x128xf32> to vector<8x128xf32>
    %105 = vector.shape_cast %102 : vector<8x128xf32> to vector<1x8x128xf32>
    tpu.vector_store %arg6[%c0_60, %c0_61, %c0_62], %105 {strides = array<i32>} : memref<1x8x128xf32, #tpu.memory_space<vmem>>, vector<1x8x128xf32>,
    return
  }
  func.func @transform_0(%arg0: i32, %arg1: i32) -> (i32, i32, i32) {
    %c0_i32 = arith.constant 0 : i32
    %c0_i32_0 = arith.constant 0 : i32
    return %arg0, %c0_i32, %arg1 : i32, i32, i32
  }
  func.func @transform_1(%arg0: i32, %arg1: i32) -> (i32, i32, i32, i32) {
    %c0_i32 = arith.constant 0 : i32
    %c0_i32_0 = arith.constant 0 : i32
    %c0_i32_1 = arith.constant 0 : i32
    return %arg0, %arg1, %c0_i32, %c0_i32_0 : i32, i32, i32, i32
  }
  func.func @transform_2(%arg0: i32, %arg1: i32) -> (i32, i32, i32) {
    %c0_i32 = arith.constant 0 : i32
    %c0_i32_0 = arith.constant 0 : i32
    %c0_i32_1 = arith.constant 0 : i32
    %c0_i32_2 = arith.constant 0 : i32
    return %c0_i32, %c0_i32_0, %c0_i32_1 : i32, i32, i32
  }
  func.func @transform_3(%arg0: i32, %arg1: i32) -> (i32, i32) {
    %c0_i32 = arith.constant 0 : i32
    %c0_i32_0 = arith.constant 0 : i32
    %c0_i32_1 = arith.constant 0 : i32
    return %c0_i32, %c0_i32_0 : i32, i32
  }
  func.func @transform_4(%arg0: i32, %arg1: i32) -> (i32, i32, i32) {
    %c0_i32 = arith.constant 0 : i32
    %c0_i32_0 = arith.constant 0 : i32
    return %arg0, %c0_i32, %arg1 : i32, i32, i32
  }
}

</mosaic_0001>

<bundles_post_ra>
// kernel: mul.8
= control target key start
LH: loop header
LB: loop body
LE: loop exit
PB: predicated region body
PF: predicated region fallthrough
CT: control target
= control target key end

     0   :  { %vm21_vm0 = vcmask 23552   ;;  %s49_s14 = smov 3   ;;  %vm27_vm1 = vcmask 72752   ;;  %vm33_vm2 = vcmask 48152   ;;  %s75_s0 = inlined_call_operand.vmem [shape: f32[3,3,4], index: 0, kind: input, shape index: {}]   ;;  %s76_s1 = inlined_call_operand.vmem [shape: f32[9,4], index: 1, kind: output, shape index: {}]  }
   0x1   :  { %v43_v0 = vld [vmem:[%s75_s0 + $0xc] sm:$0xf]  ;;  %v44_v1 = vld [vmem:[%s75_s0 + $0x8] sm:$0xf]  ;;  %v45_v2 = vld [vmem:[%s75_s0 + $0x4] sm:$0xf] }
   0x2   :  { %8 = vst [vmem:[#allocation1 + $0x18] sm:$0xf] %v43_v0  ;;  %13 = vst [vmem:[#allocation1 + $0x10] sm:$0xf] %v44_v1  ;;  %v18_v3 = vld [vmem:[%s75_s0] sm:$0xf] }
   0x3   :  { %17 = vst [vmem:[#allocation1 + $0x8] sm:$0xf] %v45_v2  ;;  %19 = vst [vmem:[#allocation1] sm:$0xf] %v18_v3  ;;  %s48_s0 = smov 6  }
   0xa   :  { %v24_v4 = vld [vmem:[#allocation1 + $0x2] ss:$8 sm:$0xf]   ;;  %v20_v5 = vld [vmem:[#allocation1] ss:$8 sm:$0xf]  }
   0xb   :  { %25 = vrot.lane.b32.xlu0 %v24_v4, %s48_s0  ;;  %v30_v6 = vld [vmem:[#allocation1 + $0x1] ss:$8 sm:$0xf]   ;;  %22 = vst.msk [vmem:[#allocation0] sm:$0xf] %vm21_vm0, %v20_v5  }
   0xf   :  { %31 = vrot.lane.b32.xlu0 %v30_v6, %s49_s14 }
  0x7d   :  { %v26_v7 = vpop.permute.xlu0 %25  }
  0x7e   :  { %28 = vst.msk [vmem:[#allocation0] sm:$0xf] %vm27_vm1, %v26_v7  }
  0x81   :  { %v32_v8 = vpop.permute.xlu0 %31  }
  0x82   :  { %34 = vst.msk [vmem:[#allocation0] sm:$0xf] %vm33_vm2, %v32_v8  }
  0x89   :  { %v38_v9 = vld [vmem:[#allocation0] sm:$0xf] }
  0x8a   :  { %40 = vst [vmem:[%s76_s1] sm:$0xf] %v38_v9 }

// kernel: dwconv_pallas.1
= control target key start
LH: loop header
LB: loop body
LE: loop exit
PB: predicated region body
PF: predicated region fallthrough
CT: control target
= control target key end

     0   :  { %s1426_s15 = smov 0   ;;  %s1428_s16 = smov 0   ;;  %s1582_s0 = inlined_call_operand.vmem [shape: f32[2,4,256], index: 0, kind: input, shape index: {}]   ;;  %s1583_s1 = inlined_call_operand.vmem [shape: f32[2,2,4,32], index: 1, kind: input, shape index: {}]   ;;  %s1584_s2 = inlined_call_operand.vmem [shape: f32[9,8,4], index: 2, kind: input, shape index: {}]   ;;  %s1585_s3 = inlined_call_operand.vmem [shape: f32[8,1], index: 3, kind: input, shape index: {}]   ;;  %s1586_s4 = inlined_call_operand.vmem [shape: f32[2,8,256], index: 4, kind: output, shape index: {}]  }
   0x1   :  { %s1430_s17 = smov 0   ;;  %s1432_s18 = smov 0  }
   0x2   :  { %s1434_s19 = smov 0  }
   0x3 LB: > { %s23_s20 = sadd.s32 1, %s1380_s17  ;;  %s26_s21 = sadd.s32 1, %s1384_s18  ;;  %s1388_s19 = sphi %s1434_s19, %s14_s19   ;;  %s1384_s18 = sphi %s1432_s18, %s1594_s18   ;;  %s1380_s17 = sphi %s1430_s17, %s1593_s17   ;;  %s1376_s16 = sphi %s1428_s16, %s1592_s16   ;;  %s1372_s15 = sphi %s1426_s15, %s1591_s15  }
   0x4   : > { %p24_p0 = scmp.ge.s32.totalorder %s23_s20, 2  ;;  %p1197_p1 = scmp.ge.s32.totalorder %s1388_s19, 1 }
   0x5   : > { %p196_p2 = scmp.lt.s32.totalorder %s1388_s19, 5 }
   0x6   : > { %s1596_s20 = smov (%p24_p0, %s23_s20), 0  ;;  %s1598_s21 = smov (!%p24_p0, %s26_s21), %s1384_s18 }
   0x7   : > { %p197_p3 = pnand %p1197_p1, %p196_p2  ;;  %p28_p4 = scmp.ge.s32.totalorder %s1598_s21, 2 }
   0x8   : > { %p236_p5 = scmp.lt.s32.totalorder (!%p197_p3), %s1376_s16, 1  ;;  %p238_p6 = scmp.lt.s32.totalorder (!%p197_p3), %s1372_s15, 1  ;;  %vm265_vm0 = vcmask (!%p197_p3), 1044352   ;;  %vm269_vm1 = vcmask (!%p197_p3), 125952   ;;  %v1391_v3 = vmov (!%p197_p3), 0.0   ;;  %vm1394_vm2 = vmmov (!%p197_p3), 0  }
   0x9   : > { %s1600_s21 = smov (%p28_p4, %s1598_s21), 0  ;;  %200 = sbr.rel (%p197_p3) target bundleno = 508 (0x1fc), region = 36 }
   0xa   : > { %s1390_s5 = smov (!%p197_p3), 112   ;;  %1255 = vmatprep.subr.mxu1 (!%p197_p3), %v1391_v3  ;;  %1250 = vmatprep.subr.mxu0 (!%p197_p3), %v1391_v3  ;;  %s1392_s6 = smov (!%p197_p3), 17   ;;  %v1398_v8 = vmov (!%p197_p3), 0   ;;  %v1081_v9 = vld [vmem:[%s1585_s3] sm:$0xff] (!%p197_p3)  ;;  %v271_v10 = vlaneseq (!%p197_p3)  ;;  %vm296_vm3 = vcmask (!%p197_p3), 138240   ;;  %vm313_vm5 = vcmask (!%p197_p3), 1043456  }
   0xb   : > { %s1393_s7 = smov (!%p197_p3), 16   ;;  %1252 = vmatprep.mubr.msk.f32.mxu0 (!%p197_p3), %vm1394_vm2, %v1391_v3  ;;  %1257 = vmatprep.mubr.msk.f32.mxu1 (!%p197_p3), %vm1394_vm2, %v1391_v3  ;;  %s1395_s8 = smov (!%p197_p3), 15   ;;  %vm309_vm6 = vcmask (!%p197_p3), 31744   ;;  %v300_v19 = vld [vmem:[%s1584_s2] sm:$0xff] (!%p197_p3)  ;;  %vm471_vm7 = vcmask (!%p197_p3), 121856   ;;  %vm561_vm8 = vcmask (!%p197_p3), 7168  }
   0xc   : > { %s1396_s9 = smov (!%p197_p3), 1   ;;  %s1397_s10 = smov (!%p197_p3), 127   ;;  %1346 = vset.pattern.permute.xlu1 (!%p197_p3), %v1398_v8  ;;  %1347 = vset.pattern.permute.xlu0 (!%p197_p3), %v1398_v8  ;;  %v272_v11 = vand.u32 (!%p197_p3), 127, %v271_v10  ;;  %vm307_vm9 = vcmask (!%p197_p3), 130048   ;;  %v1204_v27 = vld [vmem:[%s1584_s2 + $0x8] sm:$0xff] (!%p197_p3)  ;;  %vm731_vm11 = vcmask (!%p197_p3), 1039360  }
   0xd   : > { %s1399_s11 = smov (!%p197_p3), 113   ;;  %s1400_s12 = smov (!%p197_p3), 111   ;;  %v1212_v32 = vld [vmem:[%s1584_s2 + $0x18] sm:$0xff] (!%p197_p3)  ;;  %v1209_v35 = vld [vmem:[%s1584_s2 + $0x10] sm:$0xff] (!%p197_p3)  ;;  %vm821_vm12 = vcmask (!%p197_p3), 924672   ;;  %v1218_v39 = vld [vmem:[%s1584_s2 + $0x28] sm:$0xff] (!%p197_p3) }
   0xe   : > { %v277_v12 = vand.u32 (!%p197_p3), 15, %v272_v11  ;;  %v1215_v42 = vld [vmem:[%s1584_s2 + $0x20] sm:$0xff] (!%p197_p3)  ;;  %vm913_vm13 = vcmask (!%p197_p3), 916480   ;;  %v1221_v47 = vld [vmem:[%s1584_s2 + $0x30] sm:$0xff] (!%p197_p3)  ;;  %v1224_v48 = vld [vmem:[%s1584_s2 + $0x38] sm:$0xff] (!%p197_p3)  ;;  %vm998_vm14 = vcmask (!%p197_p3), 908288  }
   0xf   : > { %v1227_v53 = vld [vmem:[%s1584_s2 + $0x40] sm:$0xff] (!%p197_p3) }
  0x10   : > { %s1602_s16 = smov (!%p236_p5, %s1376_s16), 1  ;;  %s1604_s15 = smov (!%p238_p6, %s1372_s15), 1  ;;  %vm1477_vm4 = vcmp.gt.s32.totalorder %v277_v12, 0  ;;  %vm1491_vm10 = vcmp.lt.s32.totalorder %v277_v12, 15 }
  0x11   : > { %s1198_s22 = sshll.u32 %s1602_s16, 1 }
  0x12   : > { %s1456_s23 = sadd.s32 %s1198_s22, %s1604_s15 }
  0x13   : > { %s1199_s24 = sshll.u32 %s1456_s23, 2  ;;  %s1203_s13 = sshll.u32 %s1456_s23, 3 }
  0x14   : > { %s251_s27 = scalar_lea.vmem %s1583_s1, %s1199_s24  ;;  %s243_s30 = scalar_lea.vmem %s1582_s0, %s1199_s24 }
  0x15   : > { %v260_v0 = vld [vmem:[%s251_s27] sm:$0xf]  ;;  %s259_s16 = scalar_lea.vmem %s1586_s4, %s1203_s13 }
  0x16   : > { %v267_v1 = vld [vmem:[%s243_s30] sm:$0xf]  ;;  %262 = vrot.lane.b32.xlu0 %v260_v0, %s1390_s5 }
  0x17   : > { %268 = vst [vmem:[#allocation2 + $0x4] sm:$0xf] %v267_v1 }
  0x1e   : > { %v644_v37 = vld [vmem:[#allocation2 + $0x4] sm:$0xf] }
  0x88   : > { %v263_v2 = vpop.permute.xlu0 %262 }
  0x89   : > { %266 = vst.msk [vmem:[#allocation2] sm:$0xf] %vm265_vm0, %v263_v2 }
  0x8a   : > { %270 = vst.msk [vmem:[#allocation2 + $0x8] sm:$0xf] %vm269_vm1, %v263_v2 }
  0x90   : > { %v287_v4 = vld [vmem:[#allocation2] sm:$0xff] }
  0x91   : > { %292 = vrot.lane.b32.xlu1 %v287_v4, %s1392_s6  ;;  %303 = vrot.lane.b32.xlu0 %v287_v4, %s1393_s7  ;;  %v466_v5 = vcombine.high %v287_v4, %v287_v4  ;;  %v724_v6 = vld [vmem:[#allocation2 + $0x4] sm:$0xff] }
  0x92   : > { %v726_v7 = vcombine.high %v724_v6, %v724_v6 }
  0x95   : > { %467 = vrot.lane.b32.xlu1 %v287_v4, %s1395_s8  ;;  %294 = vrot.lane.b32.xlu0 %v466_v5, %s1392_s6 }
  0x99   : > { %557 = vrot.lane.b32.xlu1 %v287_v4, %s1396_s9  ;;  %469 = vrot.lane.b32.xlu0 %v466_v5, %s1395_s8 }
  0x9d   : > { %559 = vrot.lane.b32.xlu0 %v466_v5, %s1396_s9  ;;  %305 = vrot.lane.b32.xlu1 %v466_v5, %s1393_s7 }
  0xa1   : > { %729 = vrot.lane.b32.xlu0 %v726_v7, %s1397_s10  ;;  %727 = vrot.lane.b32.xlu1 %v724_v6, %s1397_s10 }
  0xa5   : > { %819 = vrot.lane.b32.xlu0 %v726_v7, %s1399_s11  ;;  %817 = vrot.lane.b32.xlu1 %v724_v6, %s1399_s11 }
  0xa9   : > { %911 = vrot.lane.b32.xlu0 %v726_v7, %s1390_s5  ;;  %909 = vrot.lane.b32.xlu1 %v724_v6, %s1390_s5 }
  0xad   : > { %996 = vrot.lane.b32.xlu0 %v726_v7, %s1400_s12  ;;  %994 = vrot.lane.b32.xlu1 %v724_v6, %s1400_s12 }
  0xb1   : > { %1084 = vperm.xlu1 %1346, %v1081_v9  }
 0x103   : > { %v293_v13 = vpop.permute.xlu1 %292  ;;  %v304_v14 = vpop.permute.xlu0 %303 }
 0x107   : > { %v468_v16 = vpop.permute.xlu1 %467  ;;  %v295_v17 = vpop.permute.xlu0 %294 }
 0x108   : > { %v297_v18 = vsel %vm296_vm3, %v293_v13, %v295_v17 }
 0x109   : > { %v299_v20 = vsel %vm1477_vm4, %v297_v18, 0.0 }
 0x10a   : > { %1256 = vmatpush3.msk.msra.mxu1 %vm313_vm5, %v299_v20 }
 0x10b   : > { %v558_v21 = vpop.permute.xlu1 %557  ;;  %v470_v22 = vpop.permute.xlu0 %469  ;;  %1265 = vmatprep.subr.mxu1 %v1391_v3  ;;  %1258 = vmatmul.mubr.msk.f32.vlgmr.msra.gmra.mrb[0].mxu1 %vm309_vm6, %v300_v19 }
 0x10c   : > { %1267 = vmatprep.mubr.msk.f32.mxu1 %vm1394_vm2, %v1391_v3  ;;  %v472_v24 = vsel %vm471_vm7, %v468_v16, %v470_v22 }
 0x10d   : > { %v474_v31 = vsel %vm1491_vm10, %v472_v24, 0.0 }
 0x10f   : > { %v560_v25 = vpop.permute.xlu0 %559  ;;  %v306_v26 = vpop.permute.xlu1 %305 }
 0x110   : > { %v562_v28 = vsel %vm561_vm8, %v558_v21, %v560_v25  ;;  %v308_v29 = vsel %vm307_vm9, %v304_v14, %v306_v26 }
 0x111   : > { %v564_v30 = vsel %vm1477_vm4, %v562_v28, 0.0  ;;  %1251 = vmatpush3.msk.msra.mxu0 %vm313_vm5, %v308_v29 }
 0x112   : > { %1253 = vmatmul.mubr.msk.f32.vlgmr.msra.gmra.mrb[0].mxu0 %vm309_vm6, %v1204_v27  ;;  %1260 = vmatprep.subr.mxu0 %v1391_v3 }
 0x113   : > { %1266 = vmatpush3.msk.msra.mxu1 %vm313_vm5, %v564_v30  ;;  %v730_v33 = vpop.permute.xlu0 %729  ;;  %1261 = vmatpush3.msk.msra.mxu0 %vm313_vm5, %v474_v31  ;;  %v728_v34 = vpop.permute.xlu1 %727 }
 0x114   : > { %v732_v36 = vsel %vm731_vm11, %v728_v34, %v730_v33  ;;  %1262 = vmatprep.mubr.msk.f32.mxu0 %vm1394_vm2, %v1391_v3  ;;  %1275 = vmatprep.subr.mxu1 %v1391_v3 }
 0x115   : > { %v734_v38 = vsel %vm1491_vm10, %v732_v36, 0.0  ;;  %1268 = vmatmul.mubr.msk.f32.vlgmr.msra.gmra.mrb[2].mxu1 %vm309_vm6, %v1212_v32  ;;  %1270 = vmatprep.subr.mxu0 %v1391_v3 }
 0x116   : > { %1263 = vmatmul.mubr.msk.f32.vlgmr.msra.gmra.mrb[2].mxu0 %vm309_vm6, %v1209_v35  ;;  %1276 = vmatpush3.msk.msra.mxu1 %vm313_vm5, %v734_v38 }
 0x117   : > { %v820_v40 = vpop.permute.xlu0 %819  ;;  %v818_v41 = vpop.permute.xlu1 %817  ;;  %1271 = vmatpush3.msk.msra.mxu0 %vm313_vm5, %v644_v37  ;;  %1272 = vmatprep.mubr.msk.f32.mxu0 %vm1394_vm2, %v1391_v3 }
 0x118   : > { %v822_v43 = vsel %vm821_vm12, %v818_v41, %v820_v40  ;;  %1280 = vmatprep.subr.mxu0 %v1391_v3  ;;  %1277 = vmatprep.mubr.msk.f32.mxu1 %vm1394_vm2, %v1391_v3 }
 0x119   : > { %v824_v44 = vsel %vm1477_vm4, %v822_v43, 0.0  ;;  %1285 = vmatprep.subr.mxu1 %v1391_v3  ;;  %1278 = vmatmul.mubr.msk.f32.vlgmr.msra.gmra.mrb[4].mxu1 %vm309_vm6, %v1218_v39 }
 0x11a   : > { %1273 = vmatmul.mubr.msk.f32.vlgmr.msra.gmra.mrb[4].mxu0 %vm309_vm6, %v1215_v42  ;;  %1287 = vmatprep.mubr.msk.f32.mxu1 %vm1394_vm2, %v1391_v3 }
 0x11b   : > { %1281 = vmatpush3.msk.msra.mxu0 %vm313_vm5, %v824_v44  ;;  %v912_v45 = vpop.permute.xlu0 %911  ;;  %v910_v46 = vpop.permute.xlu1 %909  ;;  %1282 = vmatprep.mubr.msk.f32.mxu0 %vm1394_vm2, %v1391_v3 }
 0x11c   : > { %v914_v49 = vsel %vm913_vm13, %v910_v46, %v912_v45  ;;  %1290 = vmatprep.subr.mxu0 %v1391_v3 }
 0x11d   : > { %1286 = vmatpush3.msk.msra.mxu1 %vm313_vm5, %v914_v49 }
 0x11e   : > { %1283 = vmatmul.mubr.msk.f32.vlgmr.msra.gmra.mrb[6].mxu0 %vm309_vm6, %v1221_v47  ;;  %1288 = vmatmul.mubr.msk.f32.vlgmr.msra.gmra.mrb[6].mxu1 %vm309_vm6, %v1224_v48 }
 0x11f   : > { %v997_v50 = vpop.permute.xlu0 %996  ;;  %v995_v51 = vpop.permute.xlu1 %994  ;;  %1292 = vmatprep.mubr.msk.f32.mxu0 %vm1394_vm2, %v1391_v3 }
 0x120   : > { %v999_v52 = vsel %vm998_vm14, %v995_v51, %v997_v50 }
 0x121   : > { %v1001_v54 = vsel %vm1491_vm10, %v999_v52, 0.0 }
 0x122   : > { %1291 = vmatpush3.msk.msra.mxu0 %vm313_vm5, %v1001_v54 }
 0x123   : > { %1293 = vmatmul.mubr.msk.f32.vlgmr.msra.gmra.mrb[8].mxu0 %vm309_vm6, %v1227_v53 }
 0x130   : > { %v1085_v15 = vpop.permute.xlu1 %1084 }
 0x1de   : > { %v458_v55 = vpop.f32.mrb[0].mxu1 }
 0x1df   : > { %v1259_v56 = vpop.f32.mrb[1].mxu1 }
 0x1e5   : > { %v382_v57 = vpop.f32.mrb[0].mxu0 }
 0x1e6   : > { %v1254_v58 = vpop.f32.mrb[1].mxu0  ;;  %v459_v59 = vadd.f32 %v458_v55, %v382_v57 }
 0x1e8   : > { %v639_v60 = vpop.f32.mrb[2].mxu1 }
 0x1e9   : > { %v549_v61 = vpop.f32.mrb[2].mxu0  ;;  %v1269_v62 = vpop.f32.mrb[3].mxu1 }
 0x1ea   : > { %v553_v63 = vadd.f32 %v549_v61, %v459_v59  ;;  %v1264_v0 = vpop.f32.mrb[3].mxu0 }
 0x1ec   : > { %v643_v1 = vadd.f32 %v639_v60, %v553_v63  ;;  %v809_v2 = vpop.f32.mrb[4].mxu1 }
 0x1ed   : > { %v719_v3 = vpop.f32.mrb[4].mxu0  ;;  %v1279_v4 = vpop.f32.mrb[5].mxu1 }
 0x1ee   : > { %v723_v5 = vadd.f32 %v719_v3, %v643_v1  ;;  %v1274_v6 = vpop.f32.mrb[5].mxu0 }
 0x1f0   : > { %v813_v7 = vadd.f32 %v809_v2, %v723_v5 }
 0x1f1   : > { %v899_v8 = vpop.f32.mrb[6].mxu0  ;;  %v986_v9 = vpop.f32.mrb[6].mxu1 }
 0x1f2   : > { %v903_v10 = vadd.f32 %v899_v8, %v813_v7  ;;  %v1284_v11 = vpop.f32.mrb[7].mxu0  ;;  %v1289_v12 = vpop.f32.mrb[7].mxu1 }
 0x1f4   : > { %v990_v13 = vadd.f32 %v986_v9, %v903_v10 }
 0x1f6   : > { %v1076_v14 = vpop.f32.mrb[8].mxu0 }
 0x1f7   : > { %v1080_v16 = vadd.f32 %v1076_v14, %v990_v13  ;;  %v1294_v17 = vpop.f32.mrb[9].mxu0 }
 0x1f9   : > { %v1087_v18 = vadd.f32 %v1085_v15, %v1080_v16 }
 0x1fb   : > { %1088 = vst [vmem:[%s259_s16] sm:$0xff] %v1087_v18 }
 0x1fc PF: > { %s14_s19 = sadd.s32 1, %s1388_s19   ;;  %s1591_s15 = smov %s1380_s17 }
 0x1fd   : > { %p11_p7 = scmp.ge.s32.totalorder %s14_s19, 6   ;;  %s1592_s16 = smov %s1384_s18 }
 0x1fe   : > { %s1593_s17 = smov %s1596_s20  ;;  %s1594_s18 = smov %s1600_s21 }
 0x1ff   :  { %13 = sbr.rel (!%p11_p7) target bundleno = 3 (0x3), region = 77 }

</bundles_post_ra>
